<compile_context>
chip_gen: v6e
topology: v6e:2x2x1
jax: 0.10.0
libtpu: 0.0.40
codegen_flags: <defaults>
</compile_context>

<pallas_src>
import jax
import jax.numpy as jnp
from jax.experimental import pallas as pl
from jax.experimental.pallas import tpu as pltpu

LANES = 128  # TPU lane width


def _linear_lane_dense_kernel(x_ref, w_ref, b_ref, o_ref):
    # x_ref: (tile_r, p*128) VMEM -- 128 original batch rows packed per VMEM
    #        row, features contiguous along lanes (fully lane-dense).
    # w_ref: (p*128, 128) VMEM    -- block-structured weight, w_ref[p*c+f, c] = w[f].
    # b_ref: (1,) SMEM            -- bias scalar.
    # o_ref: (tile_r, 128) VMEM   -- lane-dense output, o_ref[r, c] = y[128*r + c].
    acc = jnp.dot(x_ref[...], w_ref[...], preferred_element_type=jnp.float32)
    o_ref[...] = (acc + b_ref[0]).astype(o_ref.dtype)


def regression_model_forward(x, weight, bias, *, input_dtype=None,
                             tile_rows=2048):
    """x: (N, p) float, weight: (1, p) (PyTorch nn.Linear layout), bias: (1,).

    Returns (N, 1, 1) float32, matching `self.linear(x).unsqueeze(1)`.
    input_dtype=None computes in x.dtype (no extra HBM pass); pass
    jnp.bfloat16 explicitly to opt into reduced-precision inputs.
    """
    n, p_dim = x.shape
    assert weight.shape == (1, p_dim) and bias.shape == (1,)

    compute_dtype = jnp.dtype(input_dtype) if input_dtype is not None else x.dtype

    # Pad the batch to a multiple of 128 so rows pack into the lane axis.
    n_pad = (-n) % LANES
    if n_pad:
        x = jnp.pad(x, ((0, n_pad), (0, 0)))
    rows = (n + n_pad) // LANES

    # Free, contiguous reshape: column c*p + f of x2 holds feature f of
    # original batch row 128*r + c.  Only cast when the caller asked for it.
    if x.dtype != compute_dtype:
        x = x.astype(compute_dtype)
    x2 = x.reshape(rows, LANES * p_dim)

    # Expand the (1, p) weight into a block-structured (p*128, 128) matrix via
    # a broadcasted-iota mask (single fused elementwise op; no scatter).
    w_vec = weight.reshape(p_dim).astype(jnp.float32)
    big_rows = p_dim * LANES
    row_ids = jax.lax.broadcasted_iota(jnp.int32, (big_rows, LANES), 0)
    col_ids = jax.lax.broadcasted_iota(jnp.int32, (big_rows, LANES), 1)
    w_rep = jnp.tile(w_vec, LANES)            # w_rep[j] = w[j % p]
    big_w = jnp.where((row_ids // p_dim) == col_ids, w_rep[:, None], 0.0)
    big_w = big_w.astype(compute_dtype)

    b = bias.reshape(1).astype(jnp.float32)

    # Row-tile: big enough to amortize per-step overhead, multiple of 8
    # (sublane rule) unless it covers the whole row dim, and clamped so the
    # grid keeps >= 2 steps when possible (v7x megacore sharding of the
    # "parallel" batch axis).
    if rows <= 8:
        tile_r = rows
    else:
        target = min(tile_rows, (rows + 1) // 2)
        tile_r = max(8, ((target + 7) // 8) * 8)
        if tile_r >= rows:
            tile_r = rows
    grid = (pl.cdiv(rows, tile_r),)

    x_item = jnp.dtype(compute_dtype).itemsize
    cost = pl.CostEstimate(
        flops=2 * rows * (LANES * p_dim) * LANES,     # actual MXU FLOPs
        transcendentals=0,
        bytes_accessed=rows * LANES * p_dim * x_item  # x
        + p_dim * LANES * LANES * x_item              # expanded weight (once)
        + rows * LANES * 4 + 4)                       # output + bias

    out = pl.pallas_call(
        _linear_lane_dense_kernel,
        out_shape=jax.ShapeDtypeStruct((rows, LANES), jnp.float32),
        grid_spec=pltpu.PrefetchScalarGridSpec(
            num_scalar_prefetch=0,
            grid=grid,
            in_specs=[
                pl.BlockSpec((tile_r, LANES * p_dim), lambda i: (i, 0)),
                # Constant block index -> weight is DMA'd into VMEM only once.
                pl.BlockSpec((LANES * p_dim, LANES), lambda i: (0, 0)),
                pl.BlockSpec(memory_space=pltpu.MemorySpace.SMEM),
            ],
            out_specs=pl.BlockSpec((tile_r, LANES), lambda i: (i, 0)),
        ),
        compiler_params=pltpu.CompilerParams(
            dimension_semantics=("parallel",),
            vmem_limit_bytes=48 * 1024 * 1024),
        cost_estimate=cost,
    )(x2, big_w, b)

    # (rows, 128) -> (N,) -> (N, 1, 1): pure reshape glue (the .unsqueeze(1)).
    # Slice only when the batch was actually padded.
    y = out.reshape(rows * LANES)
    if n_pad:
        y = y[:n]
    return y.reshape(n, 1, 1)


if __name__ == "__main__":
    p = 12
    key = jax.random.PRNGKey(0)
    kx, kw, kb = jax.random.split(key, 3)

    # nn.Linear-style uniform init bound.
    bound = 1.0 / (p ** 0.5)
    weight = jax.random.uniform(kw, (1, p), jnp.float32, -bound, bound)
    bias = jax.random.uniform(kb, (1,), jnp.float32, -bound, bound)
    # self.factor = nn.Parameter(torch.tensor(1.0)) -- unused in forward().
    factor = jnp.float32(1.0)  # noqa: F841  TODO(synk): factor is not consumed by forward()

    def reference(xv, wv, bv):
        return (xv @ wv.T + bv)[:, None, :]

    # 1) Default path: f32 caller -> f32 compute, no wrapper cast, no padding,
    #    single grid step.
    n = 256
    x = jax.random.normal(kx, (n, p), jnp.float32)
    out = jax.block_until_ready(regression_model_forward(x, weight, bias))
    ref = reference(x, weight, bias)
    assert out.shape == (n, 1, 1), out.shape
    assert jnp.allclose(out, ref, atol=3e-2, rtol=3e-2), \
        float(jnp.max(jnp.abs(out - ref)))

    # 2) Opt-in bf16 input path (bandwidth-optimized), f32 accumulation.
    out_bf16 = jax.block_until_ready(
        regression_model_forward(x, weight, bias, input_dtype=jnp.bfloat16))
    ref_bf16 = reference(x.astype(jnp.bfloat16).astype(jnp.float32),
                         weight.astype(jnp.bfloat16).astype(jnp.float32), bias)
    assert out_bf16.shape == (n, 1, 1)
    assert jnp.allclose(out_bf16, ref_bf16, atol=6e-2, rtol=6e-2), \
        float(jnp.max(jnp.abs(out_bf16 - ref_bf16)))

    # 3) Odd batch (exercises padding + final slice) + tiny tile cap
    #    (exercises multi-step grid with a partial final block).
    n_odd = 2500
    x_odd = jax.random.normal(kx, (n_odd, p), jnp.float32)
    out_odd = jax.block_until_ready(
        regression_model_forward(x_odd, weight, bias, tile_rows=8))
    ref_odd = reference(x_odd, weight, bias)
    assert out_odd.shape == (n_odd, 1, 1)
    assert jnp.allclose(out_odd, ref_odd, atol=3e-2, rtol=3e-2), \
        float(jnp.max(jnp.abs(out_odd - ref_odd)))

    print("KERNEL_OK")
</pallas_src>

<mosaic_0001>
module attributes {stable_mosaic.version = 11 : i64} {
  func.func @_linear_lane_dense_kernel(%arg0: i32, %arg1: memref<2x1536xf32, #tpu.memory_space<vmem>>, %arg2: memref<1536x128xf32, #tpu.memory_space<vmem>>, %arg3: memref<1xf32, #tpu.memory_space<smem>>, %arg4: memref<2x128xf32, #tpu.memory_space<vmem>>) attributes {dimension_semantics = [#tpu.dimension_semantics<parallel>], iteration_bounds = array<i64: 1>, scalar_prefetch = 0 : i64, scratch_operands = 0 : i64, tpu.core_type = #tpu.core_type<tc>, window_params = [{transform_indices = @transform_0, window_bounds = array<i64: 2, 1536>}, {pipeline_mode = #tpu.pipeline_mode<synchronous>, transform_indices = @transform_1, window_bounds = array<i64: 1536, 128>}, {transform_indices = @transform_2, window_bounds = array<i64: 1>}, {transform_indices = @transform_3, window_bounds = array<i64: 2, 128>}]} {
    %c0 = arith.constant 0 : index
    %c0_0 = arith.constant 0 : index
    %0 = vector.load %arg1[%c0, %c0_0] : memref<2x1536xf32, #tpu.memory_space<vmem>>, vector<2x1536xf32>
    %c0_1 = arith.constant 0 : index
    %c0_2 = arith.constant 0 : index
    %1 = vector.load %arg2[%c0_1, %c0_2] : memref<1536x128xf32, #tpu.memory_space<vmem>>, vector<1536x128xf32>
    %cst = arith.constant dense<0.000000e+00> : vector<2x128xf32>
    %2 = tpu.matmul %0, %1, %cst {dimension_numbers = #tpu.dot_dimension_numbers<[1], [0], [0], [1], [0, 0, 1, 1], [], []>} : vector<2x1536xf32>, vector<1536x128xf32>, vector<2x128xf32> -> vector<2x128xf32>
    %c0_3 = arith.constant 0 : index
    %3 = memref.load %arg3[%c0_3] : memref<1xf32, #tpu.memory_space<smem>>
    %4 = vector.broadcast %3 : f32 to vector<2x128xf32>
    %5 = arith.addf %2, %4 : vector<2x128xf32>
    %c0_4 = arith.constant 0 : index
    %c0_5 = arith.constant 0 : index
    %6 = vector.load %arg4[%c0_4, %c0_5] : memref<2x128xf32, #tpu.memory_space<vmem>>, vector<2x128xf32>
    tpu.vector_store %arg4[%c0_4, %c0_5], %5 {strides = array<i32>} : memref<2x128xf32, #tpu.memory_space<vmem>>, vector<2x128xf32>,
    return
  }
  func.func @transform_0(%arg0: i32) -> (i32, i32) {
    %c0_i32 = arith.constant 0 : i32
    %c0_i32_0 = arith.constant 0 : i32
    return %arg0, %c0_i32 : i32, i32
  }
  func.func @transform_1(%arg0: i32) -> (i32, i32) {
    %c0_i32 = arith.constant 0 : i32
    %c0_i32_0 = arith.constant 0 : i32
    %c0_i32_1 = arith.constant 0 : i32
    return %c0_i32, %c0_i32_0 : i32, i32
  }
  func.func @transform_2(%arg0: i32) -> i32 {
    %c0_i32 = arith.constant 0 : i32
    %c0_i32_0 = arith.constant 0 : i32
    return %c0_i32 : i32
  }
  func.func @transform_3(%arg0: i32) -> (i32, i32) {
    %c0_i32 = arith.constant 0 : i32
    %c0_i32_0 = arith.constant 0 : i32
    return %arg0, %c0_i32 : i32, i32
  }
}

</mosaic_0001>

<bundles_post_ra>
// kernel: tpu_custom_call.1
= control target key start
LH: loop header
LB: loop body
LE: loop exit
PB: predicated region body
PF: predicated region fallthrough
CT: control target
= control target key end

     0   :  { %9 = vsyncpa [#allocation4], 0  ;;  %s1073_s0 = inlined_call_operand.hbm [shape: f32[2,1536], index: 0, kind: input, shape index: {}]   ;;  %s1074_s1 = inlined_call_operand.hbm [shape: f32[1536,128], index: 1, kind: input, shape index: {}]   ;;  %s1075_s2 = inlined_call_operand.<no memory space> [shape: f32[1], index: 2, kind: input, shape index: {}]   ;;  %s1076_s3 = inlined_call_operand.hbm [shape: f32[2,128], index: 3, kind: output, shape index: {}]  }
   0x1   :  { %10 = vsyncpa [#allocation7], 0 }
   0x2   :  { %11 = vsyncpa [#allocation5], 0  ;;  %s1027_s12 = smov [#allocation3]   ;;  %s1028_s14 = smov [#allocation6]  }
   0x3   :  { %s18_s13 = sshll.u32 %s1027_s12, 4  ;;  %s27_s15 = sshll.u32 %s1028_s14, 4  ;;  %s19_s13 = int_to_ptr.vmem [resolvable:$true] %s18_s13  ;;  %s28_s15 = int_to_ptr.vmem [resolvable:$true] %s27_s15 }
   0x4   :  { %s969_s16 = scalar_lea.vmem %s19_s13, 384  ;;  %p974_p1 = scmp.lt.s32.totalorder %s19_s13, %s19_s13 }
   0x5   :  { %p970_p0 = scmp.ne.s32.totalorder %s19_s13, %s969_s16  ;;  %p975_p2 = scmp.lt.s32.totalorder %s969_s16, %s969_s16 }
   0x7   :  { %p976_p3 = por %p975_p2, %p974_p1 }
   0x9   :  { %p977_p4 = pnand %p976_p3, %p970_p0 }
   0xb   :  { %980 = shalt.err (!%p977_p4)
}
   0xc   :  { %21 = dma.hbm_to_vmem [thread:$0]  %s1073_s0, 384, %s19_s13, [#allocation4]  }
   0xd   :  { %s989_s19 = scalar_lea.vmem %s28_s15, 24576  ;;  %p994_p6 = scmp.lt.s32.totalorder %s28_s15, %s28_s15 }
   0xe   :  { %p990_p5 = scmp.ne.s32.totalorder %s28_s15, %s989_s19  ;;  %p995_p7 = scmp.lt.s32.totalorder %s989_s19, %s989_s19 }
  0x10   :  { %p996_p8 = por %p995_p7, %p994_p6 }
  0x12   :  { %p997_p9 = pnand %p996_p8, %p990_p5 }
  0x14   :  { %1000 = shalt.err (!%p997_p9)
}
  0x15   :  { %s1029_s20 = smov 128   ;;  %s1030_s21 = smov 8  }
  0x16   :  { %33 = dma.hbm_to_vmem [thread:$0]  %s1074_s1, 24576, %s28_s15, [#allocation7], %s1029_s20, %s1029_s20, %s1030_s21  }
  0x17   :  { %1021 = dma.done.wait [#allocation4], 384  }
  0x18   :  { %1022 = vsyncadd [#allocation4], 4294966912 }
  0x19   :  { %1023 = dma.done.wait [#allocation7], 24576  }
  0x1a   :  { %1024 = vsyncadd [#allocation7], 4294942720  ;;  %v76_v0 = vld [vmem:[#allocation6 + $0xf8] sm:$0xff]  ;;  %v75_v4 = vld [vmem:[#allocation6 + $0xf0] sm:$0xff]  ;;  %v1031_v30 = vmov 1983009808   ;;  %v246_v32 = vlaneseq }
  0x1b   :  { %v108_v1 = vld [vmem:[#allocation6 + $0x1f8] sm:$0xff]  ;;  %742 = vmatprep.subr.mxu0 %v76_v0  ;;  %v107_v5 = vld [vmem:[#allocation6 + $0x1f0] sm:$0xff]  ;;  %v74_v8 = vld [vmem:[#allocation6 + $0xe8] sm:$0xff]  ;;  %v244_v31 = vunpack.c.l.s4 %v1031_v30  ;;  %s1032_s24 = smov [#allocation8]  }
  0x1c   :  { %v60_v2 = vld [vmem:[#allocation6 + $0x78] sm:$0xff]  ;;  %777 = vmatprep.subr.mxu1 %v108_v1  ;;  %v59_v6 = vld [vmem:[#allocation6 + $0x70] sm:$0xff]  ;;  %v106_v9 = vld [vmem:[#allocation6 + $0x1e8] sm:$0xff]  ;;  %v247_v42 = vshrl.u32 %v246_v32, 7  ;;  %s732_s25 = sshll.u32 %s1032_s24, 4  ;;  %s733_s25 = int_to_ptr.vmem [resolvable:$true] %s732_s25 }
  0x1d   :  { %v92_v3 = vld [vmem:[#allocation6 + $0x178] sm:$0xff]  ;;  %743 = vmatpush3.msra.mxu0 %v60_v2  ;;  %v91_v7 = vld [vmem:[#allocation6 + $0x170] sm:$0xff]  ;;  %v58_v10 = vld [vmem:[#allocation6 + $0x68] sm:$0xff]  ;;  %v245_v41 = vunpack.c.0.s8 %v244_v31  ;;  %p1006_p11 = scmp.lt.s32.totalorder %s733_s25, %s733_s25 }
  0x1e   :  { %778 = vmatpush3.msra.mxu1 %v92_v3  ;;  %744 = vmatprep.subr.mxu0 %v75_v4  ;;  %v90_v11 = vld [vmem:[#allocation6 + $0x168] sm:$0xff]  ;;  %v73_v12 = vld [vmem:[#allocation6 + $0xe0] sm:$0xff]  ;;  %v72_v16 = vld [vmem:[#allocation6 + $0xd8] sm:$0xff] }
  0x1f   :  { %779 = vmatprep.subr.mxu1 %v107_v5  ;;  %745 = vmatpush3.msra.mxu0 %v59_v6  ;;  %v105_v13 = vld [vmem:[#allocation6 + $0x1e0] sm:$0xff]  ;;  %v104_v17 = vld [vmem:[#allocation6 + $0x1d8] sm:$0xff]  ;;  %v71_v20 = vld [vmem:[#allocation6 + $0xd0] sm:$0xff]  ;;  %v1059_v51 = vsub.s32 %v245_v41, %v247_v42 }
  0x20   :  { %780 = vmatpush3.msra.mxu1 %v91_v7  ;;  %746 = vmatprep.subr.mxu0 %v74_v8  ;;  %v57_v14 = vld [vmem:[#allocation6 + $0x60] sm:$0xff]  ;;  %v56_v18 = vld [vmem:[#allocation6 + $0x58] sm:$0xff]  ;;  %v103_v21 = vld [vmem:[#allocation6 + $0x1d0] sm:$0xff] }
  0x21   :  { %781 = vmatprep.subr.mxu1 %v106_v9  ;;  %v89_v15 = vld [vmem:[#allocation6 + $0x160] sm:$0xff]  ;;  %747 = vmatpush3.msra.mxu0 %v58_v10  ;;  %v88_v19 = vld [vmem:[#allocation6 + $0x158] sm:$0xff]  ;;  %v55_v22 = vld [vmem:[#allocation6 + $0x50] sm:$0xff] }
  0x22   :  { %782 = vmatpush3.msra.mxu1 %v90_v11  ;;  %748 = vmatprep.subr.mxu0 %v73_v12  ;;  %v87_v23 = vld [vmem:[#allocation6 + $0x150] sm:$0xff]  ;;  %v70_v24 = vld [vmem:[#allocation6 + $0xc8] sm:$0xff]  ;;  %v69_v28 = vld [vmem:[#allocation6 + $0xc0] sm:$0xff] }
  0x23   :  { %783 = vmatprep.subr.mxu1 %v105_v13  ;;  %749 = vmatpush3.msra.mxu0 %v57_v14  ;;  %v102_v25 = vld [vmem:[#allocation6 + $0x1c8] sm:$0xff]  ;;  %v101_v29 = vld [vmem:[#allocation6 + $0x1c0] sm:$0xff]  ;;  %v68_v35 = vld [vmem:[#allocation6 + $0xb8] sm:$0xff] }
  0x24   :  { %784 = vmatpush3.msra.mxu1 %v89_v15  ;;  %750 = vmatprep.subr.mxu0 %v72_v16  ;;  %v54_v26 = vld [vmem:[#allocation6 + $0x48] sm:$0xff]  ;;  %v53_v33 = vld [vmem:[#allocation6 + $0x40] sm:$0xff]  ;;  %v100_v36 = vld [vmem:[#allocation6 + $0x1b8] sm:$0xff] }
  0x25   :  { %785 = vmatprep.subr.mxu1 %v104_v17  ;;  %751 = vmatpush3.msra.mxu0 %v56_v18  ;;  %v86_v27 = vld [vmem:[#allocation6 + $0x148] sm:$0xff]  ;;  %v85_v34 = vld [vmem:[#allocation6 + $0x140] sm:$0xff]  ;;  %v52_v37 = vld [vmem:[#allocation6 + $0x38] sm:$0xff] }
  0x26   :  { %786 = vmatpush3.msra.mxu1 %v88_v19  ;;  %752 = vmatprep.subr.mxu0 %v71_v20  ;;  %v84_v38 = vld [vmem:[#allocation6 + $0x138] sm:$0xff]  ;;  %v67_v39 = vld [vmem:[#allocation6 + $0xb0] sm:$0xff]  ;;  %v66_v45 = vld [vmem:[#allocation6 + $0xa8] sm:$0xff] }
  0x27   :  { %787 = vmatprep.subr.mxu1 %v103_v21  ;;  %753 = vmatpush3.msra.mxu0 %v55_v22  ;;  %v99_v40 = vld [vmem:[#allocation6 + $0x1b0] sm:$0xff]  ;;  %v98_v46 = vld [vmem:[#allocation6 + $0x1a8] sm:$0xff]  ;;  %v65_v49 = vld [vmem:[#allocation6 + $0xa0] sm:$0xff] }
  0x28   :  { %788 = vmatpush3.msra.mxu1 %v87_v23  ;;  %754 = vmatprep.subr.mxu0 %v70_v24  ;;  %v51_v43 = vld [vmem:[#allocation6 + $0x30] sm:$0xff]  ;;  %v50_v47 = vld [vmem:[#allocation6 + $0x28] sm:$0xff]  ;;  %v97_v50 = vld [vmem:[#allocation6 + $0x1a0] sm:$0xff] }
  0x29   :  { %789 = vmatprep.subr.mxu1 %v102_v25  ;;  %755 = vmatpush3.msra.mxu0 %v54_v26  ;;  %v83_v44 = vld [vmem:[#allocation6 + $0x130] sm:$0xff]  ;;  %v82_v48 = vld [vmem:[#allocation6 + $0x128] sm:$0xff]  ;;  %v49_v52 = vld [vmem:[#allocation6 + $0x20] sm:$0xff] }
  0x2a   :  { %790 = vmatpush3.msra.mxu1 %v86_v27  ;;  %756 = vmatprep.subr.mxu0 %v69_v28  ;;  %v81_v53 = vld [vmem:[#allocation6 + $0x120] sm:$0xff]  ;;  %v42_v54 = vld [vmem:[#allocation3] sm:$0xff]  ;;  %v64_v55 = vld [vmem:[#allocation6 + $0x98] sm:$0xff] }
  0x2b   :  { %791 = vmatprep.subr.mxu1 %v101_v29  ;;  %757 = vmatpush3.msra.mxu0 %v53_v33  ;;  %v96_v56 = vld [vmem:[#allocation6 + $0x198] sm:$0xff]  ;;  %v242_v57 = vcombine.high %v42_v54, %v42_v54  ;;  %v63_v60 = vld [vmem:[#allocation6 + $0x90] sm:$0xff]  ;;  %v249_v62 = vrot.slane %v42_v54, %v1059_v51  ;;  %v62_v1 = vld [vmem:[#allocation6 + $0x88] sm:$0xff] }
  0x2c   :  { %792 = vmatpush3.msra.mxu1 %v85_v34  ;;  %758 = vmatprep.subr.mxu0 %v68_v35  ;;  %v48_v58 = vld [vmem:[#allocation6 + $0x18] sm:$0xff]  ;;  %v95_v61 = vld [vmem:[#allocation6 + $0x190] sm:$0xff]  ;;  %v94_v2 = vld [vmem:[#allocation6 + $0x188] sm:$0xff] }
  0x2d   :  { %793 = vmatprep.subr.mxu1 %v100_v36  ;;  %759 = vmatpush3.msra.mxu0 %v52_v37  ;;  %v80_v59 = vld [vmem:[#allocation6 + $0x118] sm:$0xff]  ;;  %v47_v63 = vld [vmem:[#allocation6 + $0x10] sm:$0xff]  ;;  %v256_v3 = vrot.slane %v242_v57, %v1059_v51  ;;  %v46_v4 = vld [vmem:[#allocation6 + $0x8] sm:$0xff]  ;;  %v257_v8 = vcombine.high %v249_v62, %v249_v62 }
  0x2e   :  { %794 = vmatpush3.msra.mxu1 %v84_v38  ;;  %760 = vmatprep.subr.mxu0 %v67_v39  ;;  %v79_v0 = vld [vmem:[#allocation6 + $0x110] sm:$0xff]  ;;  %v78_v5 = vld [vmem:[#allocation6 + $0x108] sm:$0xff]  ;;  %v61_v6 = vld [vmem:[#allocation6 + $0x80] sm:$0xff] }
  0x2f   :  { %795 = vmatprep.subr.mxu1 %v99_v40  ;;  %761 = vmatpush3.msra.mxu0 %v51_v43  ;;  %v93_v7 = vld [vmem:[#allocation6 + $0x180] sm:$0xff]  ;;  %v258_v11 = vcombine.high %v256_v3, %v256_v3  ;;  %v140_v12 = vld [vmem:[#allocation6 + $0x2f8] sm:$0xff]  ;;  %v139_v16 = vld [vmem:[#allocation6 + $0x2f0] sm:$0xff] }
  0x30   :  { %796 = vmatpush3.msra.mxu1 %v83_v44  ;;  %762 = vmatprep.subr.mxu0 %v66_v45  ;;  %v45_v9 = vld [vmem:[#allocation6] sm:$0xff]  ;;  %v172_v13 = vld [vmem:[#allocation6 + $0x3f8] sm:$0xff]  ;;  %v171_v17 = vld [vmem:[#allocation6 + $0x3f0] sm:$0xff] }
  0x31   :  { %797 = vmatprep.subr.mxu1 %v98_v46  ;;  %763 = vmatpush3.msra.mxu0 %v50_v47  ;;  %v77_v10 = vld [vmem:[#allocation6 + $0x100] sm:$0xff]  ;;  %v124_v14 = vld [vmem:[#allocation6 + $0x278] sm:$0xff]  ;;  %v123_v18 = vld [vmem:[#allocation6 + $0x270] sm:$0xff] }
  0x32   :  { %798 = vmatpush3.msra.mxu1 %v82_v48  ;;  %764 = vmatprep.subr.mxu0 %v65_v49  ;;  %v156_v15 = vld [vmem:[#allocation6 + $0x378] sm:$0xff]  ;;  %v155_v19 = vld [vmem:[#allocation6 + $0x370] sm:$0xff]  ;;  %v138_v20 = vld [vmem:[#allocation6 + $0x2e8] sm:$0xff] }
  0x33   :  { %799 = vmatprep.subr.mxu1 %v97_v50  ;;  %765 = vmatpush3.msra.mxu0 %v49_v52  ;;  %v170_v21 = vld [vmem:[#allocation6 + $0x3e8] sm:$0xff]  ;;  %v137_v24 = vld [vmem:[#allocation6 + $0x2e0] sm:$0xff]  ;;  %v136_v28 = vld [vmem:[#allocation6 + $0x2d8] sm:$0xff] }
  0x34   :  { %800 = vmatpush3.msra.mxu1 %v81_v53  ;;  %766 = vmatprep.subr.mxu0 %v64_v55  ;;  %v122_v22 = vld [vmem:[#allocation6 + $0x268] sm:$0xff]  ;;  %v169_v25 = vld [vmem:[#allocation6 + $0x3e0] sm:$0xff]  ;;  %v168_v29 = vld [vmem:[#allocation6 + $0x3d8] sm:$0xff] }
  0x35   :  { %801 = vmatprep.subr.mxu1 %v96_v56  ;;  %767 = vmatpush3.msra.mxu0 %v48_v58  ;;  %v154_v23 = vld [vmem:[#allocation6 + $0x368] sm:$0xff]  ;;  %v121_v26 = vld [vmem:[#allocation6 + $0x260] sm:$0xff]  ;;  %v120_v30 = vld [vmem:[#allocation6 + $0x258] sm:$0xff] }
  0x36   :  { %802 = vmatpush3.msra.mxu1 %v80_v59  ;;  %768 = vmatprep.subr.mxu0 %v63_v60  ;;  %v153_v27 = vld [vmem:[#allocation6 + $0x360] sm:$0xff]  ;;  %v152_v31 = vld [vmem:[#allocation6 + $0x358] sm:$0xff]  ;;  %v135_v32 = vld [vmem:[#allocation6 + $0x2d0] sm:$0xff] }
  0x37   :  { %803 = vmatprep.subr.mxu1 %v95_v61  ;;  %769 = vmatpush3.msra.mxu0 %v47_v63  ;;  %v167_v33 = vld [vmem:[#allocation6 + $0x3d0] sm:$0xff]  ;;  %v134_v36 = vld [vmem:[#allocation6 + $0x2c8] sm:$0xff]  ;;  %v133_v40 = vld [vmem:[#allocation6 + $0x2c0] sm:$0xff] }
  0x38   :  { %804 = vmatpush3.msra.mxu1 %v79_v0  ;;  %770 = vmatprep.subr.mxu0 %v62_v1  ;;  %v119_v34 = vld [vmem:[#allocation6 + $0x250] sm:$0xff]  ;;  %v166_v37 = vld [vmem:[#allocation6 + $0x3c8] sm:$0xff]  ;;  %v165_v41 = vld [vmem:[#allocation6 + $0x3c0] sm:$0xff] }
  0x39   :  { %805 = vmatprep.subr.mxu1 %v94_v2  ;;  %771 = vmatpush3.msra.mxu0 %v46_v4  ;;  %v151_v35 = vld [vmem:[#allocation6 + $0x350] sm:$0xff]  ;;  %v118_v38 = vld [vmem:[#allocation6 + $0x248] sm:$0xff]  ;;  %v117_v42 = vld [vmem:[#allocation6 + $0x240] sm:$0xff] }
  0x3a   :  { %806 = vmatpush3.msra.mxu1 %v78_v5  ;;  %772 = vmatprep.subr.mxu0 %v61_v6  ;;  %v150_v39 = vld [vmem:[#allocation6 + $0x348] sm:$0xff]  ;;  %v149_v43 = vld [vmem:[#allocation6 + $0x340] sm:$0xff]  ;;  %v132_v44 = vld [vmem:[#allocation6 + $0x2b8] sm:$0xff] }
  0x3b   :  { %807 = vmatprep.subr.mxu1 %v93_v7  ;;  %773 = vmatpush3.msra.mxu0 %v45_v9  ;;  %v164_v45 = vld [vmem:[#allocation6 + $0x3b8] sm:$0xff]  ;;  %v131_v48 = vld [vmem:[#allocation6 + $0x2b0] sm:$0xff]  ;;  %v130_v53 = vld [vmem:[#allocation6 + $0x2a8] sm:$0xff] }
  0x3c   :  { %369 = vmatprep.mubr.f32.mxu0 %v257_v8  ;;  %808 = vmatpush3.msra.mxu1 %v77_v10  ;;  %v116_v46 = vld [vmem:[#allocation6 + $0x238] sm:$0xff]  ;;  %v163_v49 = vld [vmem:[#allocation6 + $0x3b0] sm:$0xff]  ;;  %v162_v54 = vld [vmem:[#allocation6 + $0x3a8] sm:$0xff] }
  0x3d   :  { %370 = vmatmul.mubr.f32.vlgmr.msra.gmra.mxu0 %v249_v62  ;;  %439 = vmatprep.mubr.f32.mxu1 %v258_v11  ;;  %v148_v47 = vld [vmem:[#allocation6 + $0x338] sm:$0xff]  ;;  %v115_v50 = vld [vmem:[#allocation6 + $0x230] sm:$0xff]  ;;  %v114_v55 = vld [vmem:[#allocation6 + $0x228] sm:$0xff] }
  0x3e   :  { %812 = vmatprep.subr.mxu0 %v140_v12  ;;  %847 = vmatprep.subr.mxu1 %v172_v13  ;;  %v147_v52 = vld [vmem:[#allocation6 + $0x330] sm:$0xff]  ;;  %v146_v56 = vld [vmem:[#allocation6 + $0x328] sm:$0xff]  ;;  %v129_v58 = vld [vmem:[#allocation6 + $0x2a0] sm:$0xff] }
  0x3f   :  { %440 = vmatmul.mubr.f32.vlgmr.msra.gmra.mxu1 %v256_v3  ;;  %813 = vmatpush3.msra.mxu0 %v124_v14  ;;  %v43_v57 = vld [vmem:[#allocation3 + $0x8] sm:$0xff]  ;;  %v161_v59 = vld [vmem:[#allocation6 + $0x3a0] sm:$0xff]  ;;  %v128_v62 = vld [vmem:[#allocation6 + $0x298] sm:$0xff] }
  0x40   :  { %848 = vmatpush3.msra.mxu1 %v156_v15  ;;  %814 = vmatprep.subr.mxu0 %v139_v16  ;;  %v113_v60 = vld [vmem:[#allocation6 + $0x220] sm:$0xff]  ;;  %v160_v63 = vld [vmem:[#allocation6 + $0x398] sm:$0xff]  ;;  %v259_v0 = vcombine.high %v43_v57, %v43_v57  ;;  %v127_v3 = vld [vmem:[#allocation6 + $0x290] sm:$0xff]  ;;  %v266_v5 = vrot.slane %v43_v57, %v1059_v51 }
  0x41   :  { %849 = vmatprep.subr.mxu1 %v171_v17  ;;  %815 = vmatpush3.msra.mxu0 %v123_v18  ;;  %v145_v61 = vld [vmem:[#allocation6 + $0x320] sm:$0xff]  ;;  %v112_v1 = vld [vmem:[#allocation6 + $0x218] sm:$0xff]  ;;  %v159_v4 = vld [vmem:[#allocation6 + $0x390] sm:$0xff] }
  0x42   :  { %850 = vmatpush3.msra.mxu1 %v155_v19  ;;  %816 = vmatprep.subr.mxu0 %v138_v20  ;;  %v144_v2 = vld [vmem:[#allocation6 + $0x318] sm:$0xff]  ;;  %v111_v6 = vld [vmem:[#allocation6 + $0x210] sm:$0xff]  ;;  %v126_v8 = vld [vmem:[#allocation6 + $0x288] sm:$0xff]  ;;  %v273_v10 = vrot.slane %v259_v0, %v1059_v51  ;;  %v274_v15 = vcombine.high %v266_v5, %v266_v5 }
  0x43   :  { %851 = vmatprep.subr.mxu1 %v170_v21  ;;  %817 = vmatpush3.msra.mxu0 %v122_v22  ;;  %v143_v7 = vld [vmem:[#allocation6 + $0x310] sm:$0xff]  ;;  %v158_v9 = vld [vmem:[#allocation6 + $0x388] sm:$0xff]  ;;  %v125_v13 = vld [vmem:[#allocation6 + $0x280] sm:$0xff] }
  0x44   :  { %852 = vmatpush3.msra.mxu1 %v154_v23  ;;  %818 = vmatprep.subr.mxu0 %v137_v24  ;;  %v110_v11 = vld [vmem:[#allocation6 + $0x208] sm:$0xff]  ;;  %v157_v14 = vld [vmem:[#allocation6 + $0x380] sm:$0xff]  ;;  %v275_v18 = vcombine.high %v273_v10, %v273_v10  ;;  %v204_v19 = vld [vmem:[#allocation6 + $0x4f8] sm:$0xff] }
  0x45   :  { %853 = vmatprep.subr.mxu1 %v169_v25  ;;  %819 = vmatpush3.msra.mxu0 %v121_v26  ;;  %v142_v12 = vld [vmem:[#allocation6 + $0x308] sm:$0xff]  ;;  %v109_v16 = vld [vmem:[#allocation6 + $0x200] sm:$0xff]  ;;  %v236_v20 = vld [vmem:[#allocation6 + $0x5f8] sm:$0xff] }
  0x46   :  { %854 = vmatpush3.msra.mxu1 %v153_v27  ;;  %820 = vmatprep.subr.mxu0 %v136_v28  ;;  %v141_v17 = vld [vmem:[#allocation6 + $0x300] sm:$0xff]  ;;  %v188_v21 = vld [vmem:[#allocation6 + $0x478] sm:$0xff]  ;;  %v203_v23 = vld [vmem:[#allocation6 + $0x4f0] sm:$0xff] }
  0x47   :  { %855 = vmatprep.subr.mxu1 %v168_v29  ;;  %821 = vmatpush3.msra.mxu0 %v120_v30  ;;  %v220_v22 = vld [vmem:[#allocation6 + $0x578] sm:$0xff]  ;;  %v235_v24 = vld [vmem:[#allocation6 + $0x5f0] sm:$0xff]  ;;  %v202_v27 = vld [vmem:[#allocation6 + $0x4e8] sm:$0xff] }
  0x48   :  { %856 = vmatpush3.msra.mxu1 %v152_v31  ;;  %822 = vmatprep.subr.mxu0 %v135_v32  ;;  %v187_v25 = vld [vmem:[#allocation6 + $0x470] sm:$0xff]  ;;  %v234_v28 = vld [vmem:[#allocation6 + $0x5e8] sm:$0xff]  ;;  %v201_v31 = vld [vmem:[#allocation6 + $0x4e0] sm:$0xff] }
  0x49   :  { %857 = vmatprep.subr.mxu1 %v167_v33  ;;  %823 = vmatpush3.msra.mxu0 %v119_v34  ;;  %v219_v26 = vld [vmem:[#allocation6 + $0x570] sm:$0xff]  ;;  %v186_v29 = vld [vmem:[#allocation6 + $0x468] sm:$0xff]  ;;  %v233_v32 = vld [vmem:[#allocation6 + $0x5e0] sm:$0xff] }
  0x4a   :  { %858 = vmatpush3.msra.mxu1 %v151_v35  ;;  %824 = vmatprep.subr.mxu0 %v134_v36  ;;  %v218_v30 = vld [vmem:[#allocation6 + $0x568] sm:$0xff]  ;;  %v185_v33 = vld [vmem:[#allocation6 + $0x460] sm:$0xff]  ;;  %v200_v35 = vld [vmem:[#allocation6 + $0x4d8] sm:$0xff] }
  0x4b   :  { %859 = vmatprep.subr.mxu1 %v166_v37  ;;  %825 = vmatpush3.msra.mxu0 %v118_v38  ;;  %v217_v34 = vld [vmem:[#allocation6 + $0x560] sm:$0xff]  ;;  %v232_v36 = vld [vmem:[#allocation6 + $0x5d8] sm:$0xff]  ;;  %v227_v57 = vld [vmem:[#allocation6 + $0x5b0] sm:$0xff] }
  0x4c   :  { %860 = vmatpush3.msra.mxu1 %v150_v39  ;;  %826 = vmatprep.subr.mxu0 %v133_v40  ;;  %v184_v37 = vld [vmem:[#allocation6 + $0x458] sm:$0xff]  ;;  %v199_v39 = vld [vmem:[#allocation6 + $0x4d0] sm:$0xff]  ;;  %v210_v0 = vld [vmem:[#allocation6 + $0x528] sm:$0xff] }
  0x4d   :  { %861 = vmatprep.subr.mxu1 %v165_v41  ;;  %827 = vmatpush3.msra.mxu0 %v117_v42  ;;  %v216_v38 = vld [vmem:[#allocation6 + $0x558] sm:$0xff]  ;;  %v231_v40 = vld [vmem:[#allocation6 + $0x5d0] sm:$0xff] }
  0x4e   :  { %862 = vmatpush3.msra.mxu1 %v149_v43  ;;  %828 = vmatprep.subr.mxu0 %v132_v44  ;;  %v183_v41 = vld [vmem:[#allocation6 + $0x450] sm:$0xff]  ;;  %v198_v43 = vld [vmem:[#allocation6 + $0x4c8] sm:$0xff] }
  0x4f   :  { %863 = vmatprep.subr.mxu1 %v164_v45  ;;  %829 = vmatpush3.msra.mxu0 %v116_v46  ;;  %v215_v42 = vld [vmem:[#allocation6 + $0x550] sm:$0xff]  ;;  %v230_v44 = vld [vmem:[#allocation6 + $0x5c8] sm:$0xff] }
  0x50   :  { %864 = vmatpush3.msra.mxu1 %v148_v47  ;;  %830 = vmatprep.subr.mxu0 %v131_v48  ;;  %v182_v45 = vld [vmem:[#allocation6 + $0x448] sm:$0xff]  ;;  %v197_v47 = vld [vmem:[#allocation6 + $0x4c0] sm:$0xff] }
  0x51   :  { %865 = vmatprep.subr.mxu1 %v163_v49  ;;  %831 = vmatpush3.msra.mxu0 %v115_v50  ;;  %v214_v46 = vld [vmem:[#allocation6 + $0x548] sm:$0xff]  ;;  %v229_v48 = vld [vmem:[#allocation6 + $0x5c0] sm:$0xff] }
  0x52   :  { %866 = vmatpush3.msra.mxu1 %v147_v52  ;;  %832 = vmatprep.subr.mxu0 %v130_v53  ;;  %v181_v49 = vld [vmem:[#allocation6 + $0x440] sm:$0xff]  ;;  %v196_v52 = vld [vmem:[#allocation6 + $0x4b8] sm:$0xff] }
  0x53   :  { %867 = vmatprep.subr.mxu1 %v162_v54  ;;  %833 = vmatpush3.msra.mxu0 %v114_v55  ;;  %v213_v50 = vld [vmem:[#allocation6 + $0x540] sm:$0xff]  ;;  %v228_v53 = vld [vmem:[#allocation6 + $0x5b8] sm:$0xff] }
  0x54   :  { %868 = vmatpush3.msra.mxu1 %v146_v56  ;;  %834 = vmatprep.subr.mxu0 %v129_v58  ;;  %v180_v54 = vld [vmem:[#allocation6 + $0x438] sm:$0xff]  ;;  %v195_v56 = vld [vmem:[#allocation6 + $0x4b0] sm:$0xff] }
  0x55   :  { %869 = vmatprep.subr.mxu1 %v161_v59  ;;  %835 = vmatpush3.msra.mxu0 %v113_v60  ;;  %v212_v55 = vld [vmem:[#allocation6 + $0x538] sm:$0xff]  ;;  %v179_v58 = vld [vmem:[#allocation6 + $0x430] sm:$0xff]  ;;  %v194_v60 = vld [vmem:[#allocation6 + $0x4a8] sm:$0xff] }
  0x56   :  { %870 = vmatpush3.msra.mxu1 %v145_v61  ;;  %836 = vmatprep.subr.mxu0 %v128_v62  ;;  %v211_v59 = vld [vmem:[#allocation6 + $0x530] sm:$0xff]  ;;  %v226_v61 = vld [vmem:[#allocation6 + $0x5a8] sm:$0xff]  ;;  %v44_v62 = vld [vmem:[#allocation3 + $0x10] sm:$0xff] }
  0x57   :  { %871 = vmatprep.subr.mxu1 %v160_v63  ;;  %837 = vmatpush3.msra.mxu0 %v112_v1  ;;  %v178_v63 = vld [vmem:[#allocation6 + $0x428] sm:$0xff]  ;;  %v193_v1 = vld [vmem:[#allocation6 + $0x4a0] sm:$0xff] }
  0x58   :  { %872 = vmatpush3.msra.mxu1 %v144_v2  ;;  %838 = vmatprep.subr.mxu0 %v127_v3  ;;  %v225_v2 = vld [vmem:[#allocation6 + $0x5a0] sm:$0xff] }
  0x59   :  { %873 = vmatprep.subr.mxu1 %v159_v4  ;;  %839 = vmatpush3.msra.mxu0 %v111_v6  ;;  %v177_v3 = vld [vmem:[#allocation6 + $0x420] sm:$0xff]  ;;  %v192_v6 = vld [vmem:[#allocation6 + $0x498] sm:$0xff] }
  0x5a   :  { %874 = vmatpush3.msra.mxu1 %v143_v7  ;;  %840 = vmatprep.subr.mxu0 %v126_v8  ;;  %v209_v4 = vld [vmem:[#allocation6 + $0x520] sm:$0xff]  ;;  %v224_v7 = vld [vmem:[#allocation6 + $0x598] sm:$0xff] }
  0x5b   :  { %875 = vmatprep.subr.mxu1 %v158_v9  ;;  %841 = vmatpush3.msra.mxu0 %v110_v11  ;;  %v176_v8 = vld [vmem:[#allocation6 + $0x418] sm:$0xff]  ;;  %v223_v11 = vld [vmem:[#allocation6 + $0x590] sm:$0xff] }
  0x5c   :  { %876 = vmatpush3.msra.mxu1 %v142_v12  ;;  %842 = vmatprep.subr.mxu0 %v125_v13  ;;  %v208_v9 = vld [vmem:[#allocation6 + $0x518] sm:$0xff]  ;;  %v283_v12 = vrot.slane %v44_v62, %v1059_v51  ;;  %v175_v13 = vld [vmem:[#allocation6 + $0x410] sm:$0xff] }
  0x5d   :  { %877 = vmatprep.subr.mxu1 %v157_v14  ;;  %843 = vmatpush3.msra.mxu0 %v109_v16  ;;  %v207_v14 = vld [vmem:[#allocation6 + $0x510] sm:$0xff]  ;;  %v190_v16 = vld [vmem:[#allocation6 + $0x488] sm:$0xff] }
  0x5e   :  { %509 = vmatprep.mubr.f32.mxu0 %v274_v15  ;;  %878 = vmatpush3.msra.mxu1 %v141_v17  ;;  %v222_v17 = vld [vmem:[#allocation6 + $0x588] sm:$0xff] }
  0x5f   :  { %510 = vmatmul.mubr.f32.vlgmr.msra.gmra.mxu0 %v266_v5  ;;  %579 = vmatprep.mubr.f32.mxu1 %v275_v18  ;;  %v276_v5 = vcombine.high %v44_v62, %v44_v62  ;;  %v174_v18 = vld [vmem:[#allocation6 + $0x408] sm:$0xff] }
  0x60   :  { %882 = vmatprep.subr.mxu0 %v204_v19  ;;  %917 = vmatprep.subr.mxu1 %v236_v20  ;;  %v206_v19 = vld [vmem:[#allocation6 + $0x508] sm:$0xff]  ;;  %v189_v20 = vld [vmem:[#allocation6 + $0x480] sm:$0xff] }
  0x61   :  { %580 = vmatmul.mubr.f32.vlgmr.msra.gmra.mxu1 %v273_v10  ;;  %883 = vmatpush3.msra.mxu0 %v188_v21  ;;  %v191_v10 = vld [vmem:[#allocation6 + $0x490] sm:$0xff]  ;;  %v290_v15 = vrot.slane %v276_v5, %v1059_v51  ;;  %v221_v21 = vld [vmem:[#allocation6 + $0x580] sm:$0xff] }
  0x62   :  { %918 = vmatpush3.msra.mxu1 %v220_v22  ;;  %884 = vmatprep.subr.mxu0 %v203_v23  ;;  %v291_v22 = vcombine.high %v283_v12, %v283_v12  ;;  %v173_v23 = vld [vmem:[#allocation6 + $0x400] sm:$0xff] }
  0x63   :  { %919 = vmatprep.subr.mxu1 %v235_v24  ;;  %885 = vmatpush3.msra.mxu0 %v187_v25  ;;  %v292_v24 = vcombine.high %v290_v15, %v290_v15  ;;  %v205_v51 = vld [vmem:[#allocation6 + $0x500] sm:$0xff] }
  0x64   :  { %920 = vmatpush3.msra.mxu1 %v219_v26  ;;  %886 = vmatprep.subr.mxu0 %v202_v27 }
  0x65   :  { %921 = vmatprep.subr.mxu1 %v234_v28  ;;  %887 = vmatpush3.msra.mxu0 %v186_v29 }
  0x66   :  { %922 = vmatpush3.msra.mxu1 %v218_v30  ;;  %888 = vmatprep.subr.mxu0 %v201_v31  ;;  %v238_v30 = vstv %s1075_s2  ;;  %s1001_s2 = scalar_lea.vmem %s733_s25, 32 }
  0x67   :  { %923 = vmatprep.subr.mxu1 %v233_v32  ;;  %889 = vmatpush3.msra.mxu0 %v185_v33  ;;  %p1002_p10 = scmp.ne.s32.totalorder %s733_s25, %s1001_s2  ;;  %p1007_p12 = scmp.lt.s32.totalorder %s1001_s2, %s1001_s2 }
  0x68   :  { %924 = vmatpush3.msra.mxu1 %v217_v34  ;;  %890 = vmatprep.subr.mxu0 %v200_v35 }
  0x69   :  { %925 = vmatprep.subr.mxu1 %v232_v36  ;;  %891 = vmatpush3.msra.mxu0 %v184_v37  ;;  %p1008_p13 = por %p1007_p12, %p1006_p11 }
  0x6a   :  { %926 = vmatpush3.msra.mxu1 %v216_v38  ;;  %892 = vmatprep.subr.mxu0 %v199_v39 }
  0x6b   :  { %927 = vmatprep.subr.mxu1 %v231_v40  ;;  %893 = vmatpush3.msra.mxu0 %v183_v41  ;;  %p1009_p0 = pnand %p1008_p13, %p1002_p10 }
  0x6c   :  { %928 = vmatpush3.msra.mxu1 %v215_v42  ;;  %894 = vmatprep.subr.mxu0 %v198_v43 }
  0x6d   :  { %929 = vmatprep.subr.mxu1 %v230_v44  ;;  %895 = vmatpush3.msra.mxu0 %v182_v45 }
  0x6e   :  { %930 = vmatpush3.msra.mxu1 %v214_v46  ;;  %896 = vmatprep.subr.mxu0 %v197_v47 }
  0x6f   :  { %931 = vmatprep.subr.mxu1 %v229_v48  ;;  %897 = vmatpush3.msra.mxu0 %v181_v49 }
  0x70   :  { %932 = vmatpush3.msra.mxu1 %v213_v50  ;;  %898 = vmatprep.subr.mxu0 %v196_v52 }
  0x71   :  { %933 = vmatprep.subr.mxu1 %v228_v53  ;;  %899 = vmatpush3.msra.mxu0 %v180_v54 }
  0x72   :  { %934 = vmatpush3.msra.mxu1 %v212_v55  ;;  %900 = vmatprep.subr.mxu0 %v195_v56 }
  0x73   :  { %935 = vmatprep.subr.mxu1 %v227_v57  ;;  %901 = vmatpush3.msra.mxu0 %v179_v58 }
  0x74   :  { %936 = vmatpush3.msra.mxu1 %v211_v59  ;;  %902 = vmatprep.subr.mxu0 %v194_v60 }
  0x75   :  { %937 = vmatprep.subr.mxu1 %v226_v61  ;;  %903 = vmatpush3.msra.mxu0 %v178_v63 }
  0x76   :  { %938 = vmatpush3.msra.mxu1 %v210_v0  ;;  %904 = vmatprep.subr.mxu0 %v193_v1 }
  0x77   :  { %939 = vmatprep.subr.mxu1 %v225_v2  ;;  %905 = vmatpush3.msra.mxu0 %v177_v3 }
  0x78   :  { %940 = vmatpush3.msra.mxu1 %v209_v4  ;;  %906 = vmatprep.subr.mxu0 %v192_v6 }
  0x79   :  { %941 = vmatprep.subr.mxu1 %v224_v7  ;;  %907 = vmatpush3.msra.mxu0 %v176_v8 }
  0x7a   :  { %942 = vmatpush3.msra.mxu1 %v208_v9  ;;  %908 = vmatprep.subr.mxu0 %v191_v10 }
  0x7b   :  { %943 = vmatprep.subr.mxu1 %v223_v11  ;;  %909 = vmatpush3.msra.mxu0 %v175_v13 }
  0x7c   :  { %944 = vmatpush3.msra.mxu1 %v207_v14  ;;  %910 = vmatprep.subr.mxu0 %v190_v16 }
  0x7d   :  { %945 = vmatprep.subr.mxu1 %v222_v17  ;;  %911 = vmatpush3.msra.mxu0 %v174_v18 }
  0x7e   :  { %946 = vmatpush3.msra.mxu1 %v206_v19  ;;  %912 = vmatprep.subr.mxu0 %v189_v20 }
  0x7f   :  { %947 = vmatprep.subr.mxu1 %v221_v21  ;;  %913 = vmatpush3.msra.mxu0 %v173_v23 }
  0x80   :  { %649 = vmatprep.mubr.f32.mxu0 %v291_v22  ;;  %948 = vmatpush3.msra.mxu1 %v205_v51 }
  0x81   :  { %719 = vmatprep.mubr.f32.mxu1 %v292_v24  ;;  %650 = vmatmul.mubr.f32.vlgmr.msra.gmra.mxu0 %v283_v12 }
  0x82   :  { %720 = vmatmul.mubr.f32.vlgmr.msra.gmra.mxu1 %v290_v15 }
  0xfd   :  { %v774_v25 = vpop.f32.mrf.mxu0 }
  0xff   :  { %v809_v26 = vpop.f32.mrf.mxu1  ;;  %v775_v27 = vpop.f32.mrf.mxu0 }
 0x100   :  { %v776_v29 = vadd.f32 %v775_v27, %v774_v25 }
 0x101   :  { %v810_v31 = vpop.f32.mrf.mxu1 }
 0x102   :  { %v372_v34 = vadd.f32 %v776_v29, %v238_v30  ;;  %v811_v35 = vadd.f32 %v810_v31, %v809_v26 }
 0x104   :  { %v442_v38 = vadd.f32 %v811_v35, %v372_v34 }
 0x11f   :  { %v844_v28 = vpop.f32.mrf.mxu0 }
 0x121   :  { %v879_v32 = vpop.f32.mrf.mxu1  ;;  %v845_v33 = vpop.f32.mrf.mxu0 }
 0x122   :  { %v846_v36 = vadd.f32 %v845_v33, %v844_v28 }
 0x123   :  { %v880_v37 = vpop.f32.mrf.mxu1 }
 0x124   :  { %v512_v39 = vadd.f32 %v846_v36, %v442_v38  ;;  %v881_v40 = vadd.f32 %v880_v37, %v879_v32 }
 0x126   :  { %v582_v45 = vadd.f32 %v881_v40, %v512_v39 }
 0x141   :  { %v914_v41 = vpop.f32.mrf.mxu0 }
 0x142   :  { %v949_v42 = vpop.f32.mrf.mxu1 }
 0x143   :  { %v915_v43 = vpop.f32.mrf.mxu0 }
 0x144   :  { %v950_v44 = vpop.f32.mrf.mxu1  ;;  %v916_v46 = vadd.f32 %v915_v43, %v914_v41 }
 0x145   :  { %v951_v48 = vadd.f32 %v950_v44, %v949_v42 }
 0x146   :  { %v652_v47 = vadd.f32 %v916_v46, %v582_v45 }
 0x148   :  { %v722_v49 = vadd.f32 %v951_v48, %v652_v47 }
 0x14a   :  { %725 = vst [vmem:[#allocation8] sm:$0x3] %v722_v49 }
 0x14b   :  { %1012 = shalt.err (!%p1009_p0)
}
 0x14c   :  { %735 = dma.vmem_to_hbm [thread:$0]  %s733_s25, 32, %s1076_s3, [#allocation5]  }
 0x14d   :  { %1025 = dma.done.wait [#allocation5], 32  }
 0x14e   :  { %1026 = vsyncadd [#allocation5], 4294967264 }
 0x14f   :  { %739 = vsyncpa [#allocation4], 1 }
 0x150   :  { %740 = vsyncpa [#allocation7], 1 }
 0x151   :  { %741 = vsyncpa [#allocation5], 1 }

</bundles_post_ra>
